<compile_context>
chip_gen: v7x
topology: tpu7x:2x2x1
jax: 0.10.0
libtpu: 0.0.40
codegen_flags: <defaults>
</compile_context>

<pallas_src>
import functools

import jax
import jax.numpy as jnp
from jax.experimental import pallas as pl
from jax.experimental.pallas import tpu as pltpu


def _round_up(x: int, m: int) -> int:
    return (x + m - 1) // m * m


def _largest_divisor_tile(padded: int, max_tile: int, unit: int = 128) -> int:
    """Largest multiple of `unit` that divides `padded` and is <= max_tile."""
    units = padded // unit
    best = unit
    for d in range(1, units + 1):
        t = d * unit
        if units % d == 0 and t <= max_tile:
            best = t
    return best


def _linear_kernel(x_ref, w_ref, b_ref, o_ref):
    # x_ref: (tm, tk), w_ref: (tn, tk), b_ref: (1, tn), o_ref: (tm, tn) f32.
    # o_ref's block index is independent of k, so it stays resident in VMEM
    # across the whole K reduction and doubles as the f32 accumulator.
    k = pl.program_id(2)

    @pl.when(k == 0)
    def _init():
        # Initialize the resident output tile with the broadcast bias.
        o_ref[...] = jnp.broadcast_to(b_ref[...], o_ref.shape)

    # Contract the shared last (K) dim of x-tile and W-tile -> (tm, tn);
    # no XLU relayout of W, MXU accumulates in f32.
    o_ref[...] += jax.lax.dot_general(
        x_ref[...],
        w_ref[...],
        dimension_numbers=(((1,), (1,)), ((), ())),
        preferred_element_type=jnp.float32,
    )


@functools.partial(jax.jit, static_argnames=("tm", "tn", "tk"))
def weighted_lasso_forward(x, weight, bias, *, tm=512, tn=512, tk=512):
    """Pallas TPU implementation of WeightedLasso.forward (a Linear layer).

    x:      (batch, input_dim)      float32
    weight: (output_dim, input_dim) float32
    bias:   (output_dim,)           float32
    returns (batch, output_dim)     float32   ( == x @ W.T + b )
    """
    x = x.astype(jnp.float32)
    weight = weight.astype(jnp.float32)
    bias = bias.astype(jnp.float32)

    B, D = x.shape
    O, D2 = weight.shape
    assert D == D2, (D, D2)

    # Lane-dense padded extents (multiples of 128 for N/K, 8 for M).
    Np = _round_up(O, 128)
    Kp = _round_up(D, 128)

    # Tiles that exactly divide the 128-rounded extents -> no K/N over-padding
    # beyond the unavoidable 128 rounding (e.g. D=384 -> tk=384, not 512).
    tn = _largest_divisor_tile(Np, tn)
    tk = _largest_divisor_tile(Kp, tk)
    tm = min(tm, _round_up(B, 8))
    Mp = _round_up(B, tm)

    # v7x megacore: guarantee >=2 blocks along the "parallel" (M, N) axes when
    # the problem allows it, so both TensorCores get work.  No-op on v5e/v6e.
    if (Mp // tm) * (Np // tn) < 2 and Np // 128 >= 2:
        tn = _largest_divisor_tile(Np, Np // 2)

    # Conditional zero-padding (skipped entirely when already aligned).
    if Mp != B or Kp != D:
        x = jnp.pad(x, ((0, Mp - B), (0, Kp - D)))
    if Np != O or Kp != D:
        weight = jnp.pad(weight, ((0, Np - O), (0, Kp - D)))
    bias2d = bias.reshape(1, O)
    if Np != O:
        bias2d = jnp.pad(bias2d, ((0, 0), (0, Np - O)))

    grid = (Mp // tm, Np // tn, Kp // tk)

    # VMEM budget from the actual double-buffered f32 footprint plus headroom
    # for Mosaic internal scratch (never request all of v7x's 64 MiB).
    itemsize = 4
    footprint = (2 * (tm * tk + tn * tk + tn) + 2 * tm * tn) * itemsize
    vmem_limit = min(footprint + (8 << 20), 100 << 20)

    out = pl.pallas_call(
        _linear_kernel,
        out_shape=jax.ShapeDtypeStruct((Mp, Np), jnp.float32),
        grid_spec=pltpu.PrefetchScalarGridSpec(
            num_scalar_prefetch=0,
            grid=grid,
            in_specs=[
                pl.BlockSpec((tm, tk), lambda i, j, k: (i, k)),   # x tile
                pl.BlockSpec((tn, tk), lambda i, j, k: (j, k)),   # W tile
                pl.BlockSpec((1, tn), lambda i, j, k: (0, j)),    # bias (N-only)
            ],
            out_specs=pl.BlockSpec((tm, tn), lambda i, j, k: (i, j)),
        ),
        compiler_params=pltpu.CompilerParams(
            dimension_semantics=("parallel", "parallel", "arbitrary"),
            vmem_limit_bytes=vmem_limit,
        ),
    )(x, weight, bias2d)

    if Mp != B or Np != O:
        out = out[:B, :O]
    return out


if __name__ == "__main__":
    key = jax.random.PRNGKey(0)

    def ref_linear(x, W, b):
        # Exact f32 reference (avoid XLA's default bf16 matmul precision).
        return jax.lax.dot_general(
            x, W, (((1,), (1,)), ((), ())),
            precision=jax.lax.Precision.HIGHEST) + b

    # --- Small shapes implied by the module (single grid point) ---
    batch, input_dim, output_dim = 8, 32, 4
    kx, kw, kb = jax.random.split(key, 3)
    bound = 1.0 / jnp.sqrt(jnp.float32(input_dim))
    W = jax.random.uniform(kw, (output_dim, input_dim), jnp.float32, -bound, bound)
    b = jax.random.uniform(kb, (output_dim,), jnp.float32, -bound, bound)
    x = jax.random.normal(kx, (batch, input_dim), jnp.float32)

    out = jax.block_until_ready(weighted_lasso_forward(x, W, b))
    assert out.shape == (batch, output_dim)
    assert jnp.allclose(out, ref_linear(x, W, b), atol=1e-5, rtol=1e-5)

    # --- Non-128-multiple K (384 -> tk=384, no over-padding); megacore
    #     heuristic splits N into 2 parallel blocks ---
    B2, D2_, O2 = 256, 384, 192
    kx2, kw2, kb2 = jax.random.split(jax.random.PRNGKey(1), 3)
    bound2 = 1.0 / jnp.sqrt(jnp.float32(D2_))
    W2 = jax.random.uniform(kw2, (O2, D2_), jnp.float32, -bound2, bound2)
    b2 = jax.random.uniform(kb2, (O2,), jnp.float32, -bound2, bound2)
    x2 = jax.random.normal(kx2, (B2, D2_), jnp.float32)

    out2 = jax.block_until_ready(weighted_lasso_forward(x2, W2, b2))
    assert out2.shape == (B2, O2)
    assert jnp.allclose(out2, ref_linear(x2, W2, b2), atol=1e-4, rtol=1e-4)

    # --- Multi-step K reduction (tk=512, 2 steps) and multiple N blocks ---
    B3, D3_, O3 = 384, 1024, 640
    kx3, kw3, kb3 = jax.random.split(jax.random.PRNGKey(2), 3)
    bound3 = 1.0 / jnp.sqrt(jnp.float32(D3_))
    W3 = jax.random.uniform(kw3, (O3, D3_), jnp.float32, -bound3, bound3)
    b3 = jax.random.uniform(kb3, (O3,), jnp.float32, -bound3, bound3)
    x3 = jax.random.normal(kx3, (B3, D3_), jnp.float32)

    out3 = jax.block_until_ready(weighted_lasso_forward(x3, W3, b3))
    assert out3.shape == (B3, O3)
    assert jnp.allclose(out3, ref_linear(x3, W3, b3), atol=1e-4, rtol=1e-4)

    print("KERNEL_OK")
</pallas_src>

<mosaic_0001>
module attributes {stable_mosaic.version = 11 : i64} {
  func.func @_linear_kernel(%arg0: i32, %arg1: i32, %arg2: i32, %arg3: memref<8x128xf32, #tpu.memory_space<vmem>>, %arg4: memref<128x128xf32, #tpu.memory_space<vmem>>, %arg5: memref<1x128xf32, #tpu.memory_space<vmem>>, %arg6: memref<8x128xf32, #tpu.memory_space<vmem>>) attributes {dimension_semantics = [#tpu.dimension_semantics<parallel>, #tpu.dimension_semantics<parallel>, #tpu.dimension_semantics<arbitrary>], iteration_bounds = array<i64: 1, 1, 1>, scalar_prefetch = 0 : i64, scratch_operands = 0 : i64, tpu.core_type = #tpu.core_type<tc>, window_params = [{transform_indices = @transform_0, window_bounds = array<i64: 8, 128>}, {transform_indices = @transform_1, window_bounds = array<i64: 128, 128>}, {transform_indices = @transform_2, window_bounds = array<i64: 1, 128>}, {transform_indices = @transform_3, window_bounds = array<i64: 8, 128>}]} {
    %c0_i32 = arith.constant 0 : i32
    %0 = arith.cmpi eq, %arg2, %c0_i32 : i32
    %1 = arith.extui %0 : i1 to i32
    %c0_i32_0 = arith.constant 0 : i32
    %2 = arith.cmpi ne, %1, %c0_i32_0 : i32
    scf.if %2 {
      %c0_8 = arith.constant 0 : index
      %c0_9 = arith.constant 0 : index
      %9 = vector.load %arg5[%c0_8, %c0_9] : memref<1x128xf32, #tpu.memory_space<vmem>>, vector<1x128xf32>
      %10 = vector.shape_cast %9 : vector<1x128xf32> to vector<1x128xf32>
      %11 = vector.broadcast %10 : vector<1x128xf32> to vector<8x128xf32>
      %c0_10 = arith.constant 0 : index
      %c0_11 = arith.constant 0 : index
      %12 = vector.load %arg6[%c0_10, %c0_11] : memref<8x128xf32, #tpu.memory_space<vmem>>, vector<8x128xf32>
      tpu.vector_store %arg6[%c0_10, %c0_11], %11 {strides = array<i32>} : memref<8x128xf32, #tpu.memory_space<vmem>>, vector<8x128xf32>,
    } else {
    }
    %c0 = arith.constant 0 : index
    %c0_1 = arith.constant 0 : index
    %3 = vector.load %arg6[%c0, %c0_1] : memref<8x128xf32, #tpu.memory_space<vmem>>, vector<8x128xf32>
    %c0_2 = arith.constant 0 : index
    %c0_3 = arith.constant 0 : index
    %4 = vector.load %arg3[%c0_2, %c0_3] : memref<8x128xf32, #tpu.memory_space<vmem>>, vector<8x128xf32>
    %c0_4 = arith.constant 0 : index
    %c0_5 = arith.constant 0 : index
    %5 = vector.load %arg4[%c0_4, %c0_5] : memref<128x128xf32, #tpu.memory_space<vmem>>, vector<128x128xf32>
    %cst = arith.constant dense<0.000000e+00> : vector<8x128xf32>
    %6 = tpu.matmul %4, %5, %cst {dimension_numbers = #tpu.dot_dimension_numbers<[1], [1], [0], [0], [0, 0, 1, 0], [], []>} : vector<8x128xf32>, vector<128x128xf32>, vector<8x128xf32> -> vector<8x128xf32>
    %7 = arith.addf %3, %6 : vector<8x128xf32>
    %c0_6 = arith.constant 0 : index
    %c0_7 = arith.constant 0 : index
    %8 = vector.load %arg6[%c0_6, %c0_7] : memref<8x128xf32, #tpu.memory_space<vmem>>, vector<8x128xf32>
    tpu.vector_store %arg6[%c0_6, %c0_7], %7 {strides = array<i32>} : memref<8x128xf32, #tpu.memory_space<vmem>>, vector<8x128xf32>,
    return
  }
  func.func @transform_0(%arg0: i32, %arg1: i32, %arg2: i32) -> (i32, i32) {
    %c0_i32 = arith.constant 0 : i32
    return %arg0, %arg2 : i32, i32
  }
  func.func @transform_1(%arg0: i32, %arg1: i32, %arg2: i32) -> (i32, i32) {
    %c0_i32 = arith.constant 0 : i32
    return %arg1, %arg2 : i32, i32
  }
  func.func @transform_2(%arg0: i32, %arg1: i32, %arg2: i32) -> (i32, i32) {
    %c0_i32 = arith.constant 0 : i32
    %c0_i32_0 = arith.constant 0 : i32
    return %c0_i32, %arg1 : i32, i32
  }
  func.func @transform_3(%arg0: i32, %arg1: i32, %arg2: i32) -> (i32, i32) {
    %c0_i32 = arith.constant 0 : i32
    return %arg0, %arg1 : i32, i32
  }
}

</mosaic_0001>

<bundles_post_ra>
// kernel: weighted_lasso_forward.1
= control target key start
LH: loop header
LB: loop body
LE: loop exit
PB: predicated region body
PF: predicated region fallthrough
CT: control target
= control target key end

     0   :  { %v200_v0 = vmov 0.0|0.0   ;;  %vm201_vm0 = vmmov 0   ;;  %v202_v3 = vmov 0.0   ;;  %s280_s1 = inlined_call_operand.vmem [shape: f32[128,128], index: 1, kind: input, shape index: {}]   ;;  %s281_s0 = inlined_call_operand.vmem [shape: f32[8,128], index: 0, kind: input, shape index: {}]   ;;  %s282_s2 = inlined_call_operand.vmem [shape: f32[1,128], index: 2, kind: input, shape index: {}]   ;;  %s283_s3 = inlined_call_operand.vmem [shape: f32[8,128], index: 3, kind: output, shape index: {}]  }
   0x1   :  { %173 = vmatprep.subr.bf16.mxu0 %v200_v0  ;;  %v28_v1 = vld [vmem:[%s280_s1] sm:$0xff]  ;;  %v29_v2 = vld [vmem:[%s280_s1 + $0x8] sm:$0xff]  ;;  %170 = vmatprep.mubr.msk.f32.mxu0 %vm201_vm0, %v202_v3  ;;  %v30_v5 = vld [vmem:[%s280_s1 + $0x10] sm:$0xff] }
   0x2   :  { %v174_v4 = vpack.c.bf16 %v29_v2, %v28_v1  ;;  %v31_v6 = vld [vmem:[%s280_s1 + $0x18] sm:$0xff]  ;;  %v32_v8 = vld [vmem:[%s280_s1 + $0x20] sm:$0xff]  ;;  %v33_v9 = vld [vmem:[%s280_s1 + $0x28] sm:$0xff] }
   0x3   :  { %v177_v7 = vpack.c.bf16 %v31_v6, %v30_v5  ;;  %v180_v10 = vpack.c.bf16 %v33_v9, %v32_v8  ;;  %v34_v11 = vld [vmem:[%s280_s1 + $0x30] sm:$0xff]  ;;  %v35_v12 = vld [vmem:[%s280_s1 + $0x38] sm:$0xff]  ;;  %v36_v14 = vld [vmem:[%s280_s1 + $0x40] sm:$0xff] }
   0x4   :  { %175 = vmatpush3.bf16.xpose.msra.mxu0 %v174_v4  ;;  %v183_v13 = vpack.c.bf16 %v35_v12, %v34_v11  ;;  %v37_v15 = vld [vmem:[%s280_s1 + $0x48] sm:$0xff]  ;;  %v38_v17 = vld [vmem:[%s280_s1 + $0x50] sm:$0xff]  ;;  %v39_v18 = vld [vmem:[%s280_s1 + $0x58] sm:$0xff] }
   0x5   :  { %176 = vmatprep.subr.bf16.mxu0 %v200_v0  ;;  %v186_v16 = vpack.c.bf16 %v37_v15, %v36_v14  ;;  %v189_v19 = vpack.c.bf16 %v39_v18, %v38_v17  ;;  %v40_v20 = vld [vmem:[%s280_s1 + $0x60] sm:$0xff]  ;;  %v41_v21 = vld [vmem:[%s280_s1 + $0x68] sm:$0xff]  ;;  %v42_v23 = vld [vmem:[%s280_s1 + $0x70] sm:$0xff] }
   0x6   :  { %v192_v22 = vpack.c.bf16 %v41_v21, %v40_v20  ;;  %v43_v24 = vld [vmem:[%s280_s1 + $0x78] sm:$0xff]  ;;  %v27_v26 = vld [vmem:[%s281_s0] sm:$0xff] }
   0x7   :  { %v195_v25 = vpack.c.bf16 %v43_v24, %v42_v23  ;;  %v120_v27 = vld [vmem:[%s282_s2] ss:$0 sm:$0xff] }
   0xc   :  { %178 = vmatpush3.bf16.xpose.msra.mxu0 %v177_v7 }
   0xd   :  { %179 = vmatprep.subr.bf16.mxu0 %v200_v0 }
  0x14   :  { %181 = vmatpush3.bf16.xpose.msra.mxu0 %v180_v10 }
  0x15   :  { %182 = vmatprep.subr.bf16.mxu0 %v200_v0 }
  0x1c   :  { %184 = vmatpush3.bf16.xpose.msra.mxu0 %v183_v13 }
  0x1d   :  { %185 = vmatprep.subr.bf16.mxu0 %v200_v0 }
  0x24   :  { %187 = vmatpush3.bf16.xpose.msra.mxu0 %v186_v16 }
  0x25   :  { %188 = vmatprep.subr.bf16.mxu0 %v200_v0 }
  0x2c   :  { %190 = vmatpush3.bf16.xpose.msra.mxu0 %v189_v19 }
  0x2d   :  { %191 = vmatprep.subr.bf16.mxu0 %v200_v0 }
  0x34   :  { %193 = vmatpush3.bf16.xpose.msra.mxu0 %v192_v22 }
  0x35   :  { %194 = vmatprep.subr.bf16.mxu0 %v200_v0 }
  0x3c   :  { %196 = vmatpush3.bf16.xpose.msra.mxu0 %v195_v25 }
  0x43   :  { %171 = vmatmul.mubr.f32.vlgmr.msra.gmra.mrb[0].mxu0 %v27_v26 }
 0x116   :  { %v110_v28 = vpop.f32.mrb[0].mxu0 }
 0x117   :  { %v114_v29 = vadd.f32 %v120_v27, %v110_v28  ;;  %v172_v30 = vpop.f32.mrb[1].mxu0 }
 0x119   :  { %115 = vst [vmem:[%s283_s3] sm:$0xff] %v114_v29 }

</bundles_post_ra>
